<compile_context>
chip_gen: v5e
topology: v5e:2x2
jax: 0.10.0
libtpu: 0.0.40
codegen_flags: <defaults>
</compile_context>

<pallas_src>
import functools

import jax
import jax.numpy as jnp
from jax import lax
from jax.experimental import pallas as pl
from jax.experimental.pallas import tpu as pltpu

N_KERNELS = 5
MUL_FACTOR = 2.0
# bandwidth_multipliers = mul_factor ** (arange(n_kernels) - n_kernels // 2)
MULTIPLIERS = [MUL_FACTOR ** (i - N_KERNELS // 2) for i in range(N_KERNELS)]  # [.25,.5,1,2,4]


def _rbf5(d2, neg_inv4):
    """sum_m exp(-d2/(bw*m)) for m in {4,2,1,0.5,0.25} via repeated squaring.

    neg_inv4 == -1/(4*bw)  =>  e = exp(-d2/(4*bw)); the remaining kernels are
    e^2, e^4, e^8, e^16 (pure VPU multiplies, EUP used once).
    """
    e = jnp.exp(d2 * neg_inv4)
    e2 = e * e
    e4 = e2 * e2
    e8 = e4 * e4
    e16 = e8 * e8
    return e + e2 + e4 + e8 + e16


def _mmd_kernel(x_ref, y_ref, out_ref, *, n_x, n_y):
    N = n_x + n_y
    x = x_ref[...].astype(jnp.float32)          # (n_x, d)
    y = y_ref[...].astype(jnp.float32)          # (n_y, d)

    # Gram blocks on the MXU, contraction on the last dims (no explicit
    # transpose of the RHS operand).
    dn = (((1,), (1,)), ((), ()))
    g_xx = lax.dot_general(x, x, dn, preferred_element_type=jnp.float32)   # (n_x, n_x)
    g_xy = lax.dot_general(x, y, dn, preferred_element_type=jnp.float32)   # (n_x, n_y)
    g_yy = lax.dot_general(y, y, dn, preferred_element_type=jnp.float32)   # (n_y, n_y)

    sqx = jnp.sum(x * x, axis=-1, keepdims=True)    # (n_x, 1)
    sqy = jnp.sum(y * y, axis=-1, keepdims=True)    # (n_y, 1)

    # Squared pairwise distances (== torch.cdist(Z, Z)**2, blockwise).
    d2_xx = jnp.maximum(sqx + sqx.T - 2.0 * g_xx, 0.0)
    d2_xy = jnp.maximum(sqx + sqy.T - 2.0 * g_xy, 0.0)
    d2_yy = jnp.maximum(sqy + sqy.T - 2.0 * g_yy, 0.0)

    # Data-dependent bandwidth (bandwidth=None branch of RBF.get_bandwidth):
    # sum over the full N x N distance matrix — the XY block appears twice by
    # symmetry (d2_yx == d2_xy.T).
    d2_total = jnp.sum(d2_xx) + 2.0 * jnp.sum(d2_xy) + jnp.sum(d2_yy)
    bandwidth = d2_total / float(N * N - N)

    # One exact scalar reciprocal; never divide an N x N tensor by a scalar.
    neg_inv4 = -1.0 / (4.0 * bandwidth)

    # Per-block sums of the 5-kernel RBF sum (no iota masks / selects).
    s_xx = jnp.sum(_rbf5(d2_xx, neg_inv4))
    s_xy = jnp.sum(_rbf5(d2_xy, neg_inv4))
    s_yy = jnp.sum(_rbf5(d2_yy, neg_inv4))

    xx = s_xx / float(n_x * n_x)
    xy = s_xy / float(n_x * n_y)
    yy = s_yy / float(n_y * n_y)
    out_ref[0, 0] = xx - 2.0 * xy + yy


def mmd_loss(X, Y):
    """MMDLoss.forward(X, Y) -> scalar float32."""
    n_x, d = X.shape
    n_y, d2 = Y.shape
    assert d == d2, "X and Y must have the same feature dim"
    X = X.astype(jnp.float32)
    Y = Y.astype(jnp.float32)
    N = n_x + n_y

    n_pairs = n_x * n_x + n_x * n_y + n_y * n_y
    cost = pl.CostEstimate(
        flops=2 * n_pairs * d,            # Gram blocks
        transcendentals=n_pairs,          # one exp per pair (repeated squaring)
        bytes_accessed=4 * (N * d + 1),
    )

    kernel = functools.partial(_mmd_kernel, n_x=n_x, n_y=n_y)
    out = pl.pallas_call(
        kernel,
        out_shape=jax.ShapeDtypeStruct((1, 1), jnp.float32),
        in_specs=[
            pl.BlockSpec(memory_space=pltpu.MemorySpace.VMEM),
            pl.BlockSpec(memory_space=pltpu.MemorySpace.VMEM),
        ],
        out_specs=pl.BlockSpec(memory_space=pltpu.MemorySpace.SMEM),
        cost_estimate=cost,
    )(X, Y)
    return out[0, 0]


def _mmd_loss_ref(X, Y):
    """Pure-JAX reference mirroring the PyTorch module (5 independent exps)."""
    Z = jnp.concatenate([X, Y], axis=0).astype(jnp.float32)
    n_x = X.shape[0]
    N = Z.shape[0]
    sq = jnp.sum(Z * Z, axis=-1, keepdims=True)
    d2 = jnp.maximum(sq + sq.T - 2.0 * Z @ Z.T, 0.0)
    bw = jnp.sum(d2) / (N * N - N)
    K = sum(jnp.exp(-d2 / (bw * m)) for m in MULTIPLIERS)
    XX = jnp.mean(K[:n_x, :n_x])
    XY = jnp.mean(K[:n_x, n_x:])
    YY = jnp.mean(K[n_x:, n_x:])
    return XX - 2.0 * XY + YY


if __name__ == "__main__":
    key = jax.random.PRNGKey(0)
    kx, ky = jax.random.split(key)
    n_x, n_y, d = 8, 8, 32
    X = jax.random.normal(kx, (n_x, d), dtype=jnp.float32)
    Y = jax.random.normal(ky, (n_y, d), dtype=jnp.float32) + 0.5

    out = jax.block_until_ready(mmd_loss(X, Y))

    ref = _mmd_loss_ref(X, Y)
    assert jnp.allclose(out, ref, rtol=1e-5, atol=1e-5), (out, ref)
    print("KERNEL_OK")
</pallas_src>

<mosaic_0001>
module attributes {stable_mosaic.version = 11 : i64} {
  func.func @_mmd_kernel(%arg0: memref<8x32xf32, #tpu.memory_space<vmem>>, %arg1: memref<8x32xf32, #tpu.memory_space<vmem>>, %arg2: memref<1x1xf32, #tpu.memory_space<smem>>) attributes {dimension_semantics = [], scalar_prefetch = 0 : i64, scratch_operands = 0 : i64, tpu.core_type = #tpu.core_type<tc>} {
    %c0 = arith.constant 0 : index
    %c0_0 = arith.constant 0 : index
    %0 = vector.load %arg0[%c0, %c0_0] : memref<8x32xf32, #tpu.memory_space<vmem>>, vector<8x32xf32>
    %c0_1 = arith.constant 0 : index
    %c0_2 = arith.constant 0 : index
    %1 = vector.load %arg1[%c0_1, %c0_2] : memref<8x32xf32, #tpu.memory_space<vmem>>, vector<8x32xf32>
    %cst = arith.constant dense<0.000000e+00> : vector<8x8xf32>
    %2 = tpu.matmul %0, %0, %cst {dimension_numbers = #tpu.dot_dimension_numbers<[1], [1], [0], [0], [0, 0, 1, 0], [], []>} : vector<8x32xf32>, vector<8x32xf32>, vector<8x8xf32> -> vector<8x8xf32>
    %cst_3 = arith.constant dense<0.000000e+00> : vector<8x8xf32>
    %3 = tpu.matmul %0, %1, %cst_3 {dimension_numbers = #tpu.dot_dimension_numbers<[1], [1], [0], [0], [0, 0, 1, 0], [], []>} : vector<8x32xf32>, vector<8x32xf32>, vector<8x8xf32> -> vector<8x8xf32>
    %cst_4 = arith.constant dense<0.000000e+00> : vector<8x8xf32>
    %4 = tpu.matmul %1, %1, %cst_4 {dimension_numbers = #tpu.dot_dimension_numbers<[1], [1], [0], [0], [0, 0, 1, 0], [], []>} : vector<8x32xf32>, vector<8x32xf32>, vector<8x8xf32> -> vector<8x8xf32>
    %5 = arith.mulf %0, %0 : vector<8x32xf32>
    %cst_5 = arith.constant dense<0.000000e+00> : vector<8xf32>
    %6 = vector.multi_reduction <add>, %5, %cst_5 [1] : vector<8x32xf32> to vector<8xf32>
    %7 = vector.shape_cast %6 : vector<8xf32> to vector<8x1xf32>
    %8 = arith.mulf %1, %1 : vector<8x32xf32>
    %cst_6 = arith.constant dense<0.000000e+00> : vector<8xf32>
    %9 = vector.multi_reduction <add>, %8, %cst_6 [1] : vector<8x32xf32> to vector<8xf32>
    %10 = vector.shape_cast %9 : vector<8xf32> to vector<8x1xf32>
    %11 = tpu.transpose %7, [1, 0] : vector<8x1xf32> -> vector<1x8xf32>
    %12 = vector.broadcast %7 : vector<8x1xf32> to vector<8x8xf32>
    %13 = vector.broadcast %11 : vector<1x8xf32> to vector<8x8xf32>
    %14 = arith.addf %12, %13 : vector<8x8xf32>
    %cst_7 = arith.constant 2.000000e+00 : f32
    %15 = vector.broadcast %cst_7 : f32 to vector<8x8xf32>
    %16 = arith.mulf %15, %2 : vector<8x8xf32>
    %17 = arith.subf %14, %16 : vector<8x8xf32>
    %cst_8 = arith.constant 0.000000e+00 : f32
    %18 = vector.broadcast %cst_8 : f32 to vector<8x8xf32>
    %19 = arith.maximumf %17, %18 : vector<8x8xf32>
    %20 = tpu.transpose %10, [1, 0] : vector<8x1xf32> -> vector<1x8xf32>
    %21 = vector.broadcast %7 : vector<8x1xf32> to vector<8x8xf32>
    %22 = vector.broadcast %20 : vector<1x8xf32> to vector<8x8xf32>
    %23 = arith.addf %21, %22 : vector<8x8xf32>
    %cst_9 = arith.constant 2.000000e+00 : f32
    %24 = vector.broadcast %cst_9 : f32 to vector<8x8xf32>
    %25 = arith.mulf %24, %3 : vector<8x8xf32>
    %26 = arith.subf %23, %25 : vector<8x8xf32>
    %cst_10 = arith.constant 0.000000e+00 : f32
    %27 = vector.broadcast %cst_10 : f32 to vector<8x8xf32>
    %28 = arith.maximumf %26, %27 : vector<8x8xf32>
    %29 = tpu.transpose %10, [1, 0] : vector<8x1xf32> -> vector<1x8xf32>
    %30 = vector.broadcast %10 : vector<8x1xf32> to vector<8x8xf32>
    %31 = vector.broadcast %29 : vector<1x8xf32> to vector<8x8xf32>
    %32 = arith.addf %30, %31 : vector<8x8xf32>
    %cst_11 = arith.constant 2.000000e+00 : f32
    %33 = vector.broadcast %cst_11 : f32 to vector<8x8xf32>
    %34 = arith.mulf %33, %4 : vector<8x8xf32>
    %35 = arith.subf %32, %34 : vector<8x8xf32>
    %cst_12 = arith.constant 0.000000e+00 : f32
    %36 = vector.broadcast %cst_12 : f32 to vector<8x8xf32>
    %37 = arith.maximumf %35, %36 : vector<8x8xf32>
    %38 = vector.shape_cast %19 : vector<8x8xf32> to vector<1x8x8xf32>
    %cst_13 = arith.constant dense<0.000000e+00> : vector<1xf32>
    %39 = vector.multi_reduction <add>, %38, %cst_13 [1, 2] : vector<1x8x8xf32> to vector<1xf32>
    %40 = vector.shape_cast %39 : vector<1xf32> to vector<1x1x1xf32>
    %41 = vector.extract %40[0, 0, 0] : f32 from vector<1x1x1xf32>
    %42 = vector.shape_cast %28 : vector<8x8xf32> to vector<1x8x8xf32>
    %cst_14 = arith.constant dense<0.000000e+00> : vector<1xf32>
    %43 = vector.multi_reduction <add>, %42, %cst_14 [1, 2] : vector<1x8x8xf32> to vector<1xf32>
    %44 = vector.shape_cast %43 : vector<1xf32> to vector<1x1x1xf32>
    %45 = vector.extract %44[0, 0, 0] : f32 from vector<1x1x1xf32>
    %cst_15 = arith.constant 2.000000e+00 : f32
    %46 = arith.mulf %cst_15, %45 : f32
    %47 = arith.addf %41, %46 : f32
    %48 = vector.shape_cast %37 : vector<8x8xf32> to vector<1x8x8xf32>
    %cst_16 = arith.constant dense<0.000000e+00> : vector<1xf32>
    %49 = vector.multi_reduction <add>, %48, %cst_16 [1, 2] : vector<1x8x8xf32> to vector<1xf32>
    %50 = vector.shape_cast %49 : vector<1xf32> to vector<1x1x1xf32>
    %51 = vector.extract %50[0, 0, 0] : f32 from vector<1x1x1xf32>
    %52 = arith.addf %47, %51 : f32
    %cst_17 = arith.constant 2.400000e+02 : f32
    %53 = arith.divf %52, %cst_17 : f32
    %cst_18 = arith.constant 4.000000e+00 : f32
    %54 = arith.mulf %cst_18, %53 : f32
    %cst_19 = arith.constant -1.000000e+00 : f32
    %55 = arith.divf %cst_19, %54 : f32
    %56 = vector.broadcast %55 : f32 to vector<8x8xf32>
    %57 = arith.mulf %19, %56 : vector<8x8xf32>
    %58 = math.exp %57 : vector<8x8xf32>
    %59 = arith.mulf %58, %58 : vector<8x8xf32>
    %60 = arith.mulf %59, %59 : vector<8x8xf32>
    %61 = arith.mulf %60, %60 : vector<8x8xf32>
    %62 = arith.mulf %61, %61 : vector<8x8xf32>
    %63 = arith.addf %58, %59 : vector<8x8xf32>
    %64 = arith.addf %63, %60 : vector<8x8xf32>
    %65 = arith.addf %64, %61 : vector<8x8xf32>
    %66 = arith.addf %65, %62 : vector<8x8xf32>
    %67 = vector.shape_cast %66 : vector<8x8xf32> to vector<1x8x8xf32>
    %cst_20 = arith.constant dense<0.000000e+00> : vector<1xf32>
    %68 = vector.multi_reduction <add>, %67, %cst_20 [1, 2] : vector<1x8x8xf32> to vector<1xf32>
    %69 = vector.shape_cast %68 : vector<1xf32> to vector<1x1x1xf32>
    %70 = vector.extract %69[0, 0, 0] : f32 from vector<1x1x1xf32>
    %71 = vector.broadcast %55 : f32 to vector<8x8xf32>
    %72 = arith.mulf %28, %71 : vector<8x8xf32>
    %73 = math.exp %72 : vector<8x8xf32>
    %74 = arith.mulf %73, %73 : vector<8x8xf32>
    %75 = arith.mulf %74, %74 : vector<8x8xf32>
    %76 = arith.mulf %75, %75 : vector<8x8xf32>
    %77 = arith.mulf %76, %76 : vector<8x8xf32>
    %78 = arith.addf %73, %74 : vector<8x8xf32>
    %79 = arith.addf %78, %75 : vector<8x8xf32>
    %80 = arith.addf %79, %76 : vector<8x8xf32>
    %81 = arith.addf %80, %77 : vector<8x8xf32>
    %82 = vector.shape_cast %81 : vector<8x8xf32> to vector<1x8x8xf32>
    %cst_21 = arith.constant dense<0.000000e+00> : vector<1xf32>
    %83 = vector.multi_reduction <add>, %82, %cst_21 [1, 2] : vector<1x8x8xf32> to vector<1xf32>
    %84 = vector.shape_cast %83 : vector<1xf32> to vector<1x1x1xf32>
    %85 = vector.extract %84[0, 0, 0] : f32 from vector<1x1x1xf32>
    %86 = vector.broadcast %55 : f32 to vector<8x8xf32>
    %87 = arith.mulf %37, %86 : vector<8x8xf32>
    %88 = math.exp %87 : vector<8x8xf32>
    %89 = arith.mulf %88, %88 : vector<8x8xf32>
    %90 = arith.mulf %89, %89 : vector<8x8xf32>
    %91 = arith.mulf %90, %90 : vector<8x8xf32>
    %92 = arith.mulf %91, %91 : vector<8x8xf32>
    %93 = arith.addf %88, %89 : vector<8x8xf32>
    %94 = arith.addf %93, %90 : vector<8x8xf32>
    %95 = arith.addf %94, %91 : vector<8x8xf32>
    %96 = arith.addf %95, %92 : vector<8x8xf32>
    %97 = vector.shape_cast %96 : vector<8x8xf32> to vector<1x8x8xf32>
    %cst_22 = arith.constant dense<0.000000e+00> : vector<1xf32>
    %98 = vector.multi_reduction <add>, %97, %cst_22 [1, 2] : vector<1x8x8xf32> to vector<1xf32>
    %99 = vector.shape_cast %98 : vector<1xf32> to vector<1x1x1xf32>
    %100 = vector.extract %99[0, 0, 0] : f32 from vector<1x1x1xf32>
    %cst_23 = arith.constant 6.400000e+01 : f32
    %101 = arith.divf %70, %cst_23 : f32
    %cst_24 = arith.constant 6.400000e+01 : f32
    %102 = arith.divf %85, %cst_24 : f32
    %cst_25 = arith.constant 6.400000e+01 : f32
    %103 = arith.divf %100, %cst_25 : f32
    %cst_26 = arith.constant 2.000000e+00 : f32
    %104 = arith.mulf %cst_26, %102 : f32
    %105 = arith.subf %101, %104 : f32
    %106 = arith.addf %105, %103 : f32
    %c0_27 = arith.constant 0 : index
    %c0_28 = arith.constant 0 : index
    %107 = memref.load %arg2[%c0_27, %c0_28] : memref<1x1xf32, #tpu.memory_space<smem>>
    memref.store %106, %arg2[%c0_27, %c0_28] : memref<1x1xf32, #tpu.memory_space<smem>>
    return
  }
}

</mosaic_0001>

<bundles_post_ra>
// kernel: tpu_custom_call.1
= control target key start
LH: loop header
LB: loop body
LE: loop exit
PB: predicated region body
PF: predicated region fallthrough
CT: control target
= control target key end

     0   :  { %7 = vsyncpa [#allocation3], 0  ;;  %s524_s0 = inlined_call_operand.hbm [shape: f32[8,32], index: 0, kind: input, shape index: {}]   ;;  %s525_s1 = inlined_call_operand.hbm [shape: f32[8,32], index: 1, kind: input, shape index: {}]   ;;  %s526_s2 = inlined_call_operand.hbm [shape: f32[1,1], index: 2, kind: output, shape index: {}]  }
   0x1   :  { %8 = vsyncpa [#allocation6], 0 }
   0x2   :  { %9 = vsyncpa [#allocation4], 0  ;;  %s15_s11 = sshll.u32 %s524_s0, 4  ;;  %s477_s12 = smov [#allocation2]   ;;  %s16_s11 = int_to_ptr.hbm [resolvable:$true] %s15_s11 }
   0x3   :  { %s17_s13 = sshll.u32 %s477_s12, 4  ;;  %s26_s16 = sshll.u32 %s525_s1, 4  ;;  %s18_s13 = int_to_ptr.vmem [resolvable:$true] %s17_s13  ;;  %s27_s16 = int_to_ptr.hbm [resolvable:$true] %s26_s16 }
   0x4   :  { %20 = dma.hbm_to_vmem [thread:$0]  %s16_s11, 128, %s18_s13, [#allocation3]  }
   0x5   :  { %s478_s17 = smov [#allocation5]  }
   0x6   :  { %s28_s18 = sshll.u32 %s478_s17, 4  ;;  %s29_s18 = int_to_ptr.vmem [resolvable:$true] %s28_s18 }
   0x7   :  { %31 = dma.hbm_to_vmem [thread:$0]  %s27_s16, 128, %s29_s18, [#allocation6]  }
   0x8   :  { %471 = dma.done.wait [#allocation3], 128  }
   0x9   :  { %472 = vsyncadd [#allocation3], 4294967168 }
   0xa   :  { %473 = dma.done.wait [#allocation6], 128  }
   0xb   :  { %474 = vsyncadd [#allocation6], 4294967168  ;;  %v40_v0 = vld [vmem:[#allocation2] sm:$0xff]  ;;  %vm42_vm0 = vcmask 261120   ;;  %v41_v1 = vld [vmem:[#allocation5] sm:$0xff]  ;;  %vm195_vm1 = vcmask 64512  }
   0xc   :  { %v109_v2 = vmul.f32 %v40_v0, %v40_v0  ;;  %369 = vmatpush.xpose.msk.msra.mxu0 %vm42_vm0, %v40_v0  ;;  %373 = vmatpush.xpose.msk.msra.mxu2 %vm42_vm0, %v41_v1  ;;  %v113_v4 = vmul.f32 %v41_v1, %v41_v1  ;;  %v479_v30 = vmov 240.0   ;;  %s357_s9 = sshll.u32 %s526_s2, 4  ;;  %s481_s13 = smov [#allocation7]   ;;  %s358_s9 = int_to_ptr.hbm [resolvable:$true] %s357_s9 }
   0xd   :  { %371 = vmatpush.xpose.msk.msra.mxu1 %vm42_vm0, %v41_v1  ;;  %399 = vrcp.f32 %v479_v30 }
   0xe   :  { %v110_v3 = vsel %vm42_vm0, %v109_v2, 0.0  ;;  %v114_v5 = vsel %vm42_vm0, %v113_v4, 0.0 }
   0xf   :  { %111 = vadd.xlane.f32.xlu0 %v110_v3  ;;  %370 = vmatmul.msk.f32.vlgmr.msra.gmra.mxu0 %vm42_vm0, %v40_v0 }
  0x10   :  { %374 = vmatmul.msk.f32.vlgmr.msra.gmra.mxu2 %vm42_vm0, %v41_v1  ;;  %372 = vmatmul.msk.f32.vlgmr.msra.gmra.mxu1 %vm42_vm0, %v40_v0 }
  0x13   :  { %v400_v32 = vpop.eup %399 }
  0x14   :  { %v230_v35 = vmul.f32 240.0, %v400_v32  ;;  %vm234_vm2 = vweird.f32 %v400_v32 }
  0x16   :  { %v231_v40 = vsub.f32 1.0, %v230_v35 }
  0x17   :  { %115 = vadd.xlane.f32.xlu0 %v114_v5 }
  0x18   :  { %v232_v47 = vmul.f32 %v400_v32, %v231_v40 }
  0x1a   :  { %v233_v52 = vadd.f32 %v400_v32, %v232_v47 }
  0x1c   :  { %v235_v57 = vsel %vm234_vm2, %v400_v32, %v233_v52 }
  0x82   :  { %v112_v6 = vpop.xlane.xlu0 %111 }
  0x83   :  { %117 = vxpose.xlu1.b32.start.end [1/1] (short) (narrow) %v112_v6, 8 }
  0x8a   :  { %v116_v7 = vpop.xlane.xlu0 %115 }
  0x8b   :  { %154 = vxpose.xlu1.b32.start.end [1/1] (short) (narrow) %v116_v7, 8 }
  0x8c   :  { %v63_v8 = vpop.f32.mrf.mxu0 }
  0x8d   :  { %v151_v11 = vmul.f32 2.0, %v63_v8  ;;  %v86_v14 = vpop.f32.mrf.mxu1 }
  0x8e   :  { %v188_v19 = vmul.f32 2.0, %v86_v14 }
  0x93   :  { %v106_v15 = vpop.f32.mrf.mxu2 }
  0x94   :  { %v192_v20 = vmul.f32 2.0, %v106_v15 }
 0x127   :  { %v133_v9 = vpop.trf.xlu1 }
 0x128   :  { %v149_v10 = vperm.slane %v133_v9, 0 }
 0x12a   :  { %v150_v12 = vadd.f32 %v149_v10, %v112_v6 }
 0x12c   :  { %v152_v13 = vsub.f32 %v150_v12, %v151_v11 }
 0x12e   :  { %v503_v16 = vmax.f32 %v152_v13, 0.0 }
 0x12f   :  { %v170_v17 = vpop.trf.xlu1 }
 0x130   :  { %v186_v18 = vperm.slane %v170_v17, 0  ;;  %v196_v21 = vsel %vm195_vm1, %v503_v16, 0.0 }
 0x131   :  { %197 = vadd.xlane.f32.xlu2 %v196_v21 }
 0x132   :  { %v187_v22 = vadd.f32 %v186_v18, %v112_v6  ;;  %v191_v23 = vadd.f32 %v186_v18, %v116_v7 }
 0x134   :  { %v189_v24 = vsub.f32 %v187_v22, %v188_v19  ;;  %v193_v25 = vsub.f32 %v191_v23, %v192_v20 }
 0x136   :  { %v507_v26 = vmax.f32 %v189_v24, 0.0  ;;  %v509_v27 = vmax.f32 %v193_v25, 0.0 }
 0x138   :  { %v218_v28 = vsel %vm195_vm1, %v509_v27, 0.0  ;;  %v206_v29 = vsel %vm195_vm1, %v507_v26, 0.0 }
 0x139   :  { %219 = vadd.xlane.f32.xlu0 %v218_v28  ;;  %207 = vadd.xlane.f32.xlu2 %v206_v29 }
 0x1a4   :  { %v198_v31 = vpop.xlane.xlu2 %197 }
 0x1a5   :  { %v199_v33 = vrot.slane %v198_v31, 4 }
 0x1a7   :  { %v200_v34 = vadd.f32 %v199_v33, %v198_v31 }
 0x1a9   :  { %v201_v36 = vrot.slane %v200_v34, 2 }
 0x1ab   :  { %v202_v37 = vadd.f32 %v201_v36, %v200_v34 }
 0x1ac   :  { %v220_v38 = vpop.xlane.xlu0 %219  ;;  %v208_v39 = vpop.xlane.xlu2 %207 }
 0x1ad   :  { %v221_v41 = vrot.slane %v220_v38, 4  ;;  %v209_v42 = vrot.slane %v208_v39, 4  ;;  %v203_v43 = vrot.slane %v202_v37, 1 }
 0x1af   :  { %v222_v44 = vadd.f32 %v221_v41, %v220_v38  ;;  %v210_v45 = vadd.f32 %v209_v42, %v208_v39  ;;  %v204_v46 = vadd.f32 %v203_v43, %v202_v37  ;;  %v480_v42 = vmov 64.0  }
 0x1b1   :  { %v223_v48 = vrot.slane %v222_v44, 2  ;;  %v211_v49 = vrot.slane %v210_v45, 2  ;;  %375 = vpush %v204_v46 }
 0x1b3   :  { %v212_v50 = vadd.f32 %v211_v49, %v210_v45  ;;  %v224_v51 = vadd.f32 %v223_v48, %v222_v44 }
 0x1b5   :  { %v213_v53 = vrot.slane %v212_v50, 1  ;;  %v225_v54 = vrot.slane %v224_v51, 1 }
 0x1b7   :  { %v214_v55 = vadd.f32 %v213_v53, %v212_v50  ;;  %v226_v56 = vadd.f32 %v225_v54, %v224_v51 }
 0x1b9   :  { %377 = vpush %v214_v55 }
 0x1ba   :  { %379 = vpush %v226_v56 }
 0x1bb   :  { %381 = vpush %v235_v57 }
 0x1e2   :  { %s376_s0 = spop %375 }
 0x1ea   :  { %s378_s1 = spop %377 }
 0x1eb   :  { %s216_s19 = smul.f32 2.0, %s378_s1  ;;  %s380_s21 = spop %379 }
 0x1ec   :  { %s382_s22 = spop %381 }
 0x1ed   :  { %s217_s20 = sadd.f32 %s376_s0, %s216_s19 }
 0x1ef   :  { %s228_s23 = sadd.f32 %s380_s21, %s217_s20 }
 0x1f1   :  { %s237_s24 = smul.f32 %s382_s22, %s228_s23 }
 0x1f3   :  { %s238_s25 = smul.f32 4.0, %s237_s24 }
 0x1f5   :  { %v239_v58 = vstv %s238_s25 }
 0x1f6   :  { %401 = vrcp.f32 %v239_v58  ;;  %v251_v62 = vand.u32 2147483648, %v239_v58  ;;  %v249_v0 = vand.u32 2147483647, %v239_v58  ;;  %vm245_vm4 = vweird.f32 %v239_v58 }
 0x1f8   :  { %v252_v2 = vor.u32 1.1754944e-38, %v251_v62  ;;  %vm250_vm6 = vcmp.eq.f32.partialorder %v249_v0, 8.507059e+37 }
 0x1fc   :  { %v402_v59 = vpop.eup %401 }
 0x1fd   :  { %v241_v60 = vmul.f32 %v402_v59, %v239_v58  ;;  %vm246_vm3 = vweird.f32 %v402_v59 }
 0x1fe   :  { %vm247_vm5 = vmor %vm245_vm4, %vm246_vm3 }
 0x1ff   :  { %v242_v61 = vsub.f32 1.0, %v241_v60 }
 0x201   :  { %v243_v63 = vmul.f32 %v402_v59, %v242_v61 }
 0x203   :  { %v244_v1 = vadd.f32 %v402_v59, %v243_v63 }
 0x205   :  { %v248_v3 = vsel %vm247_vm5, %v402_v59, %v244_v1 }
 0x206   :  { %v253_v4 = vsel %vm250_vm6, %v252_v2, %v248_v3 }
 0x207   :  { %383 = vpush %v253_v4 }
 0x238   :  { %s384_s26 = spop %383 }
 0x239   :  { %s255_s27 = smul.f32 -1.0, %s384_s26 }
 0x23b   :  { %v256_v5 = vstv %s255_s27 }
 0x23c   :  { %v257_v6 = vmul.f32 %v256_v5, %v503_v16  ;;  %v278_v7 = vmul.f32 %v256_v5, %v507_v26  ;;  %v299_v8 = vmul.f32 %v256_v5, %v509_v27 }
 0x23e   :  { %v258_v9 = vmul.f32 1.442695, %v257_v6  ;;  %v279_v10 = vmul.f32 1.442695, %v278_v7  ;;  %v300_v11 = vmul.f32 1.442695, %v299_v8 }
 0x240   :  { %403 = vpow2.f32 %v258_v9 }
 0x241   :  { %405 = vpow2.f32 %v279_v10 }
 0x242   :  { %407 = vpow2.f32 %v300_v11 }
 0x243   :  { %409 = vrcp.f32 %v480_v42 }
 0x246   :  { %v404_v12 = vpop.eup %403 }
 0x247   :  { %v406_v13 = vpop.eup %405  ;;  %v260_v14 = vmul.f32 %v404_v12, %v404_v12 }
 0x248   :  { %v408_v15 = vpop.eup %407  ;;  %v281_v17 = vmul.f32 %v406_v13, %v406_v13 }
 0x249   :  { %v302_v18 = vmul.f32 %v408_v15, %v408_v15  ;;  %v261_v19 = vmul.f32 %v260_v14, %v260_v14  ;;  %v264_v20 = vadd.f32 %v404_v12, %v260_v14  ;;  %v410_v43 = vpop.eup %409 }
 0x24a   :  { %v282_v21 = vmul.f32 %v281_v17, %v281_v17  ;;  %v285_v16 = vadd.f32 %v406_v13, %v281_v17  ;;  %v321_v44 = vmul.f32 64.0, %v410_v43  ;;  %vm325_vm7 = vweird.f32 %v410_v43 }
 0x24b   :  { %v303_v22 = vmul.f32 %v302_v18, %v302_v18  ;;  %v306_v23 = vadd.f32 %v408_v15, %v302_v18  ;;  %v262_v24 = vmul.f32 %v261_v19, %v261_v19  ;;  %v265_v25 = vadd.f32 %v264_v20, %v261_v19 }
 0x24c   :  { %v283_v26 = vmul.f32 %v282_v21, %v282_v21  ;;  %v286_v27 = vadd.f32 %v285_v16, %v282_v21  ;;  %v322_v48 = vsub.f32 1.0, %v321_v44 }
 0x24d   :  { %v304_v28 = vmul.f32 %v303_v22, %v303_v22  ;;  %v307_v29 = vadd.f32 %v306_v23, %v303_v22  ;;  %v263_v30 = vmul.f32 %v262_v24, %v262_v24  ;;  %v266_v31 = vadd.f32 %v265_v25, %v262_v24 }
 0x24e   :  { %v284_v32 = vmul.f32 %v283_v26, %v283_v26  ;;  %v287_v33 = vadd.f32 %v286_v27, %v283_v26  ;;  %v323_v56 = vmul.f32 %v410_v43, %v322_v48 }
 0x24f   :  { %v305_v34 = vmul.f32 %v304_v28, %v304_v28  ;;  %v308_v35 = vadd.f32 %v307_v29, %v304_v28  ;;  %v267_v36 = vadd.f32 %v266_v31, %v263_v30 }
 0x250   :  { %v288_v37 = vadd.f32 %v287_v33, %v284_v32  ;;  %v324_v63 = vadd.f32 %v410_v43, %v323_v56 }
 0x251   :  { %v309_v38 = vadd.f32 %v308_v35, %v305_v34  ;;  %v268_v39 = vsel %vm195_vm1, %v267_v36, 0.0 }
 0x252   :  { %v289_v40 = vsel %vm195_vm1, %v288_v37, 0.0  ;;  %269 = vadd.xlane.f32.xlu1 %v268_v39  ;;  %v326_v5 = vsel %vm325_vm7, %v410_v43, %v324_v63 }
 0x253   :  { %v310_v41 = vsel %vm195_vm1, %v309_v38, 0.0  ;;  %290 = vadd.xlane.f32.xlu2 %v289_v40 }
 0x254   :  { %311 = vadd.xlane.f32.xlu0 %v310_v41 }
 0x2c5   :  { %v270_v45 = vpop.xlane.xlu1 %269 }
 0x2c6   :  { %v291_v46 = vpop.xlane.xlu2 %290  ;;  %v271_v47 = vrot.slane %v270_v45, 4 }
 0x2c7   :  { %v312_v49 = vpop.xlane.xlu0 %311  ;;  %v292_v50 = vrot.slane %v291_v46, 4 }
 0x2c8   :  { %v313_v51 = vrot.slane %v312_v49, 4  ;;  %v272_v52 = vadd.f32 %v271_v47, %v270_v45 }
 0x2c9   :  { %v293_v53 = vadd.f32 %v292_v50, %v291_v46 }
 0x2ca   :  { %v314_v54 = vadd.f32 %v313_v51, %v312_v49  ;;  %v273_v55 = vrot.slane %v272_v52, 2 }
 0x2cb   :  { %v294_v57 = vrot.slane %v293_v53, 2 }
 0x2cc   :  { %v315_v58 = vrot.slane %v314_v54, 2  ;;  %v274_v59 = vadd.f32 %v273_v55, %v272_v52 }
 0x2cd   :  { %v295_v60 = vadd.f32 %v294_v57, %v293_v53 }
 0x2ce   :  { %v316_v61 = vadd.f32 %v315_v58, %v314_v54  ;;  %v275_v62 = vrot.slane %v274_v59, 1 }
 0x2cf   :  { %v296_v0 = vrot.slane %v295_v60, 1 }
 0x2d0   :  { %v276_v1 = vadd.f32 %v275_v62, %v274_v59  ;;  %v317_v2 = vrot.slane %v316_v61, 1 }
 0x2d1   :  { %v297_v3 = vadd.f32 %v296_v0, %v295_v60 }
 0x2d2   :  { %385 = vpush %v276_v1  ;;  %v318_v4 = vadd.f32 %v317_v2, %v316_v61 }
 0x2d3   :  { %387 = vpush %v297_v3 }
 0x2d4   :  { %389 = vpush %v318_v4 }
 0x2d5   :  { %391 = vpush %v326_v5 }
 0x303   :  { %s386_s28 = spop %385 }
 0x304   :  { %s388_s29 = spop %387 }
 0x305   :  { %s390_s30 = spop %389 }
 0x306   :  { %s392_s3 = spop %391 }
 0x307   :  { %s337_s4 = smul.f32 %s392_s3, %s388_s29 }
 0x308   :  { %s328_s5 = smul.f32 %s392_s3, %s386_s28 }
 0x309   :  { %s347_s6 = smul.f32 2.0, %s337_s4 }
 0x30a   :  { %s346_s10 = smul.f32 %s392_s3, %s390_s30 }
 0x30b   :  { %s348_s11 = ssub.f32 %s328_s5, %s347_s6 }
 0x30d   :  { %s349_s12 = sadd.f32 %s348_s11, %s346_s10 }
 0x30f   :  { %351 = sst [smem:[#allocation7]] %s349_s12 }
 0x310   :  { %360 = dma.smem_to_hbm %s481_s13, 16, %s358_s9, [#allocation4]  }
 0x311   :  { %475 = dma.done.wait [#allocation4], 16  }
 0x312   :  { %476 = vsyncadd [#allocation4], 4294967280 }
 0x313   :  { %365 = sfence }
 0x314   :  { %366 = vsyncpa [#allocation3], 1 }
 0x315   :  { %367 = vsyncpa [#allocation6], 1 }
 0x316   :  { %368 = vsyncpa [#allocation4], 1 }

</bundles_post_ra>
